<compile_context>
chip_gen: v5e
topology: v5e:2x2
jax: 0.10.0
libtpu: 0.0.40
codegen_flags: <defaults>
</compile_context>

<pallas_src>
import functools

import jax
import jax.numpy as jnp
from jax.experimental import pallas as pl
from jax.experimental.pallas import tpu as pltpu

_LANE = 128


def _dice_partial_kernel(logits_ref, labels_ref, inter_ref, card_ref, *,
                         hw, tile, chunk, n_chunks, ragged):
    """One grid step = (image n) x (pixel-range split s) x (pixel tile t).

    Accumulates per-class partial intersection / cardinality sums into the
    resident (C, chunk) output blocks; the tile axis (last) is the reduction.
    """
    s = pl.program_id(1)
    t = pl.program_id(2)
    tiles_per_split = pl.num_programs(2)
    tile_start = (s * tiles_per_split + t) * tile   # first pixel of this tile

    @pl.when(t == 0)
    def _():
        inter_ref[...] = jnp.zeros_like(inter_ref)
        card_ref[...] = jnp.zeros_like(card_ref)

    C = logits_ref.shape[0]
    # Hoisted loop invariants (JAX does not CSE broadcasts / iotas).
    class_ids = jax.lax.broadcasted_iota(jnp.int32, (C, chunk), 0)
    lane_ids = jax.lax.broadcasted_iota(jnp.int32, (1, chunk), 1)

    def chunk_contrib(r, masked):
        """Softmax + one-hot Dice contributions of one (C, chunk) lane slab."""
        off = pl.multiple_of(r * chunk, chunk)
        x = logits_ref[:, pl.ds(off, chunk)].astype(jnp.float32)      # (C, chunk)
        labels = labels_ref[:, pl.ds(off, chunk)].astype(jnp.int32)   # (1, chunk)
        one_hot = class_ids == labels                                 # (C, chunk)
        if masked:
            valid = (tile_start + off + lane_ids) < hw                # (1, chunk)
            x = jnp.where(valid, x, 0.0)       # mask BEFORE exp (garbage-safe)
            one_hot = jnp.logical_and(one_hot, valid)
        one_hot_f = one_hot.astype(jnp.float32)

        # Numerically stable softmax along the channel (sublane) axis.
        m = jnp.max(x, axis=0, keepdims=True)                         # (1, chunk)
        e = jnp.exp(x - m)                                            # (C, chunk)
        # TODO(synk): on v7x with bf16 logits, bf16 exp keeps the EUP off the
        # critical path; kept f32 here since v5e's EUP has no bf16 support.
        d = jnp.sum(e, axis=0, keepdims=True)
        inv = pl.reciprocal(d, approx=True)
        inv = inv * (2.0 - d * inv)            # one Newton step -> ~1e-7 rel err
        probs = e * inv
        if masked:
            probs = probs * valid.astype(jnp.float32)   # padded pixels -> 0
        return probs * one_hot_f, probs + one_hot_f

    def make_body(masked):
        def body(r, carry):
            acc_i, acc_c = carry
            ci, cc = chunk_contrib(r, masked)
            return acc_i + ci, acc_c + cc
        return body

    zeros = jnp.zeros((C, chunk), jnp.float32)
    acc = (zeros, zeros)
    if not ragged:
        # The grid covers exactly hw pixels: no mask anywhere.
        acc = jax.lax.fori_loop(0, n_chunks, make_body(False), acc,
                                unroll=n_chunks <= 8)
    else:
        # Scalar bounds: fully-valid chunks run unmasked, boundary chunks run
        # masked, fully-out-of-range chunks (padding tiles of the core split)
        # are skipped entirely.
        rem = hw - tile_start
        n_full = jnp.clip(rem // chunk, 0, n_chunks)
        n_any = jnp.clip((rem + chunk - 1) // chunk, 0, n_chunks)
        acc = jax.lax.fori_loop(0, n_full, make_body(False), acc)
        acc = jax.lax.fori_loop(n_full, n_any, make_body(True), acc)

    inter_ref[...] += acc[0]
    card_ref[...] += acc[1]


def dice_loss_pallas(logits, true, smooth=1e-6, pixel_tile=4096, num_splits=2):
    """logits: (N, C, H, W) float (f32 or bf16); true: (N, H, W) int.

    Returns the scalar Dice loss, matching the PyTorch DiceLoss module.
    """
    N, C, H, W = logits.shape
    HW = H * W
    LANE = _LANE

    # Free reshapes only -- no host-side transpose, no extra HBM pass.
    logits_k = logits.reshape(N, C, HW)
    # Narrow labels in HBM (they're pure bandwidth); kernel upcasts in-register.
    label_dtype = jnp.int8 if C <= 127 else jnp.int32
    labels_k = true.reshape(N, 1, HW).astype(label_dtype)

    if HW < LANE:
        tile = HW          # block dim == full array dim is always legal
        chunk = HW
    else:
        # Double-buffered inputs must fit well inside the explicit 32 MiB
        # scoped-VMEM limit below (valid on v5e/v6e/v7x).
        bytes_per_pixel = logits_k.dtype.itemsize * C + labels_k.dtype.itemsize
        budget = 12 * 1024 * 1024
        cap = max(LANE, (budget // (2 * bytes_per_pixel)) // LANE * LANE)
        tile = min(pixel_tile, cap, (HW // LANE) * LANE)
        chunk = LANE

    n_chunks = tile // chunk
    total_tiles = pl.cdiv(HW, tile)
    # Split the pixel-tile reduction so both v7x TensorCores get work even
    # when N == 1; harmless on single-core v5e/v6e.
    splits = max(1, min(num_splits, total_tiles))
    tiles_per_split = pl.cdiv(total_tiles, splits)
    ragged = splits * tiles_per_split * tile != HW
    last_tile = total_tiles - 1

    def in_idx(n, s, t):
        # Clamp so padding tiles of the core split never DMA out of bounds;
        # the kernel masks their contributions to zero anyway.
        return (n, 0, jnp.minimum(s * tiles_per_split + t, last_tile))

    kernel = functools.partial(
        _dice_partial_kernel, hw=HW, tile=tile, chunk=chunk,
        n_chunks=n_chunks, ragged=ragged)

    inter_out, card_out = pl.pallas_call(
        kernel,
        out_shape=(
            jax.ShapeDtypeStruct((N, splits, C, chunk), jnp.float32),
            jax.ShapeDtypeStruct((N, splits, C, chunk), jnp.float32),
        ),
        grid_spec=pltpu.PrefetchScalarGridSpec(
            num_scalar_prefetch=0,
            grid=(N, splits, tiles_per_split),
            in_specs=[
                pl.BlockSpec((pl.Squeezed(), C, tile), in_idx),
                pl.BlockSpec((pl.Squeezed(), 1, tile), in_idx),
            ],
            out_specs=[
                pl.BlockSpec((pl.Squeezed(), pl.Squeezed(), C, chunk),
                             lambda n, s, t: (n, s, 0, 0)),
                pl.BlockSpec((pl.Squeezed(), pl.Squeezed(), C, chunk),
                             lambda n, s, t: (n, s, 0, 0)),
            ],
        ),
        compiler_params=pltpu.CompilerParams(
            # Batch & split axes parallel (megacore); pixel-tile axis is the
            # reduction and stays "arbitrary" (and last).
            dimension_semantics=("parallel", "parallel", "arbitrary"),
            vmem_limit_bytes=32 * 1024 * 1024,
        ),
    )(logits_k, labels_k)

    # Tiny epilogue: reduce the (N, splits, C, 128) partials -> dice score.
    inter = jnp.sum(inter_out, axis=(0, 1, 3))        # (C,)
    card = jnp.sum(card_out, axis=(0, 1, 3))          # (C,)
    dice = (2.0 * inter + smooth) / (card + smooth)
    return 1.0 - jnp.mean(dice)


def dice_loss_ref(logits, true, smooth=1e-6):
    """Pure-JAX reference mirroring the PyTorch module exactly."""
    probs = jax.nn.softmax(logits, axis=1)                         # (N,C,H,W)
    C = probs.shape[1]
    one_hot = jax.nn.one_hot(true, C, dtype=jnp.float32)           # (N,H,W,C)
    one_hot = jnp.transpose(one_hot, (0, 3, 1, 2))                 # (N,C,H,W)
    dims = (0, 2, 3)
    intersection = jnp.sum(probs * one_hot, axis=dims)
    cardinality = jnp.sum(probs + one_hot, axis=dims)
    dice = (2.0 * intersection + smooth) / (cardinality + smooth)
    return 1.0 - jnp.mean(dice)


if __name__ == "__main__":
    N, C, H, W = 2, 4, 16, 16
    key = jax.random.PRNGKey(0)
    k_logits, k_labels = jax.random.split(key)
    logits = jax.random.normal(k_logits, (N, C, H, W), dtype=jnp.float32)
    true = jax.random.randint(k_labels, (N, H, W), 0, C, dtype=jnp.int32)

    loss = dice_loss_pallas(logits, true)
    loss = jax.block_until_ready(loss)

    ref = dice_loss_ref(logits, true)
    assert jnp.allclose(loss, ref, atol=1e-4, rtol=1e-4), (loss, ref)
    print("KERNEL_OK")
</pallas_src>

<mosaic_0001>
module attributes {stable_mosaic.version = 11 : i64} {
  func.func @_dice_partial_kernel(%arg0: i32, %arg1: i32, %arg2: i32, %arg3: memref<1x4x256xf32, #tpu.memory_space<vmem>>, %arg4: memref<1x1x256xi8, #tpu.memory_space<vmem>>, %arg5: memref<1x1x4x128xf32, #tpu.memory_space<vmem>>, %arg6: memref<1x1x4x128xf32, #tpu.memory_space<vmem>>) attributes {dimension_semantics = [#tpu.dimension_semantics<parallel>, #tpu.dimension_semantics<parallel>, #tpu.dimension_semantics<arbitrary>], iteration_bounds = array<i64: 2, 1, 1>, scalar_prefetch = 0 : i64, scratch_operands = 0 : i64, tpu.core_type = #tpu.core_type<tc>, window_params = [{transform_indices = @transform_0, window_bounds = array<i64: 1, 4, 256>}, {transform_indices = @transform_1, window_bounds = array<i64: 1, 1, 256>}, {transform_indices = @transform_2, window_bounds = array<i64: 1, 1, 4, 128>}, {transform_indices = @transform_3, window_bounds = array<i64: 1, 1, 4, 128>}]} {
    %c0_i32 = arith.constant 0 : i32
    %0 = arith.cmpi eq, %arg2, %c0_i32 : i32
    %1 = arith.extui %0 : i1 to i32
    %c0_i32_0 = arith.constant 0 : i32
    %2 = arith.cmpi ne, %1, %c0_i32_0 : i32
    scf.if %2 {
      %cst_32 = arith.constant 0.000000e+00 : f32
      %79 = vector.broadcast %cst_32 : f32 to vector<4x128xf32>
      %c0_33 = arith.constant 0 : index
      %c0_34 = arith.constant 0 : index
      %c0_35 = arith.constant 0 : index
      %c0_36 = arith.constant 0 : index
      %80 = vector.load %arg5[%c0_33, %c0_34, %c0_35, %c0_36] : memref<1x1x4x128xf32, #tpu.memory_space<vmem>>, vector<1x1x4x128xf32>
      %81 = vector.shape_cast %80 : vector<1x1x4x128xf32> to vector<4x128xf32>
      %82 = vector.shape_cast %79 : vector<4x128xf32> to vector<1x1x4x128xf32>
      tpu.vector_store %arg5[%c0_33, %c0_34, %c0_35, %c0_36], %82 {strides = array<i32>} : memref<1x1x4x128xf32, #tpu.memory_space<vmem>>, vector<1x1x4x128xf32>,
      %cst_37 = arith.constant 0.000000e+00 : f32
      %83 = vector.broadcast %cst_37 : f32 to vector<4x128xf32>
      %c0_38 = arith.constant 0 : index
      %c0_39 = arith.constant 0 : index
      %c0_40 = arith.constant 0 : index
      %c0_41 = arith.constant 0 : index
      %84 = vector.load %arg6[%c0_38, %c0_39, %c0_40, %c0_41] : memref<1x1x4x128xf32, #tpu.memory_space<vmem>>, vector<1x1x4x128xf32>
      %85 = vector.shape_cast %84 : vector<1x1x4x128xf32> to vector<4x128xf32>
      %86 = vector.shape_cast %83 : vector<4x128xf32> to vector<1x1x4x128xf32>
      tpu.vector_store %arg6[%c0_38, %c0_39, %c0_40, %c0_41], %86 {strides = array<i32>} : memref<1x1x4x128xf32, #tpu.memory_space<vmem>>, vector<1x1x4x128xf32>,
    } else {
    }
    %3 = tpu.iota {dimensions = array<i32: 0>} : vector<4x128xi32>
    %cst = arith.constant 0.000000e+00 : f32
    %4 = vector.broadcast %cst : f32 to vector<4x128xf32>
    %c0_i32_1 = arith.constant 0 : i32
    %c128_i32 = arith.constant 128 : i32
    %5 = arith.muli %c0_i32_1, %c128_i32 : i32
    %6 = tpu.assume_multiple %5, 128 : i32
    %c0 = arith.constant 0 : index
    %c0_2 = arith.constant 0 : index
    %7 = arith.index_cast %6 : i32 to index
    %8 = vector.load %arg3[%c0, %c0_2, %7] : memref<1x4x256xf32, #tpu.memory_space<vmem>>, vector<1x4x128xf32>
    %9 = vector.shape_cast %8 : vector<1x4x128xf32> to vector<4x128xf32>
    %c0_3 = arith.constant 0 : index
    %c0_4 = arith.constant 0 : index
    %10 = arith.index_cast %6 : i32 to index
    %11 = vector.load %arg4[%c0_3, %c0_4, %10] : memref<1x1x256xi8, #tpu.memory_space<vmem>>, vector<1x1x128xi8>
    %12 = vector.shape_cast %11 : vector<1x1x128xi8> to vector<1x128xi8>
    %13 = arith.extsi %12 : vector<1x128xi8> to vector<1x128xi32>
    %14 = vector.broadcast %13 : vector<1x128xi32> to vector<4x128xi32>
    %15 = arith.cmpi eq, %3, %14 : vector<4x128xi32>
    %16 = arith.extui %15 : vector<4x128xi1> to vector<4x128xi32>
    %17 = arith.sitofp %16 : vector<4x128xi32> to vector<4x128xf32>
    %cst_5 = arith.constant dense<0xFF800000> : vector<128xf32>
    %18 = vector.multi_reduction <maximumf>, %9, %cst_5 [0] : vector<4x128xf32> to vector<128xf32>
    %19 = vector.shape_cast %18 : vector<128xf32> to vector<1x128xf32>
    %20 = vector.broadcast %19 : vector<1x128xf32> to vector<4x128xf32>
    %21 = arith.subf %9, %20 : vector<4x128xf32>
    %22 = math.exp %21 : vector<4x128xf32>
    %cst_6 = arith.constant dense<0.000000e+00> : vector<128xf32>
    %23 = vector.multi_reduction <add>, %22, %cst_6 [0] : vector<4x128xf32> to vector<128xf32>
    %24 = vector.shape_cast %23 : vector<128xf32> to vector<1x128xf32>
    %25 = tpu.reciprocal %24 {approx = true} : vector<1x128xf32> -> vector<1x128xf32>
    %26 = arith.mulf %24, %25 : vector<1x128xf32>
    %cst_7 = arith.constant 2.000000e+00 : f32
    %27 = vector.broadcast %cst_7 : f32 to vector<1x128xf32>
    %28 = arith.subf %27, %26 : vector<1x128xf32>
    %29 = arith.mulf %25, %28 : vector<1x128xf32>
    %30 = vector.broadcast %29 : vector<1x128xf32> to vector<4x128xf32>
    %31 = arith.mulf %22, %30 : vector<4x128xf32>
    %32 = arith.mulf %31, %17 : vector<4x128xf32>
    %33 = arith.addf %31, %17 : vector<4x128xf32>
    %34 = arith.addf %4, %32 : vector<4x128xf32>
    %35 = arith.addf %4, %33 : vector<4x128xf32>
    %c1_i32 = arith.constant 1 : i32
    %c128_i32_8 = arith.constant 128 : i32
    %36 = arith.muli %c1_i32, %c128_i32_8 : i32
    %37 = tpu.assume_multiple %36, 128 : i32
    %c0_9 = arith.constant 0 : index
    %c0_10 = arith.constant 0 : index
    %38 = arith.index_cast %37 : i32 to index
    %39 = vector.load %arg3[%c0_9, %c0_10, %38] : memref<1x4x256xf32, #tpu.memory_space<vmem>>, vector<1x4x128xf32>
    %40 = vector.shape_cast %39 : vector<1x4x128xf32> to vector<4x128xf32>
    %c0_11 = arith.constant 0 : index
    %c0_12 = arith.constant 0 : index
    %41 = arith.index_cast %37 : i32 to index
    %42 = vector.load %arg4[%c0_11, %c0_12, %41] : memref<1x1x256xi8, #tpu.memory_space<vmem>>, vector<1x1x128xi8>
    %43 = vector.shape_cast %42 : vector<1x1x128xi8> to vector<1x128xi8>
    %44 = arith.extsi %43 : vector<1x128xi8> to vector<1x128xi32>
    %45 = vector.broadcast %44 : vector<1x128xi32> to vector<4x128xi32>
    %46 = arith.cmpi eq, %3, %45 : vector<4x128xi32>
    %47 = arith.extui %46 : vector<4x128xi1> to vector<4x128xi32>
    %48 = arith.sitofp %47 : vector<4x128xi32> to vector<4x128xf32>
    %cst_13 = arith.constant dense<0xFF800000> : vector<128xf32>
    %49 = vector.multi_reduction <maximumf>, %40, %cst_13 [0] : vector<4x128xf32> to vector<128xf32>
    %50 = vector.shape_cast %49 : vector<128xf32> to vector<1x128xf32>
    %51 = vector.broadcast %50 : vector<1x128xf32> to vector<4x128xf32>
    %52 = arith.subf %40, %51 : vector<4x128xf32>
    %53 = math.exp %52 : vector<4x128xf32>
    %cst_14 = arith.constant dense<0.000000e+00> : vector<128xf32>
    %54 = vector.multi_reduction <add>, %53, %cst_14 [0] : vector<4x128xf32> to vector<128xf32>
    %55 = vector.shape_cast %54 : vector<128xf32> to vector<1x128xf32>
    %56 = tpu.reciprocal %55 {approx = true} : vector<1x128xf32> -> vector<1x128xf32>
    %57 = arith.mulf %55, %56 : vector<1x128xf32>
    %cst_15 = arith.constant 2.000000e+00 : f32
    %58 = vector.broadcast %cst_15 : f32 to vector<1x128xf32>
    %59 = arith.subf %58, %57 : vector<1x128xf32>
    %60 = arith.mulf %56, %59 : vector<1x128xf32>
    %61 = vector.broadcast %60 : vector<1x128xf32> to vector<4x128xf32>
    %62 = arith.mulf %53, %61 : vector<4x128xf32>
    %63 = arith.mulf %62, %48 : vector<4x128xf32>
    %64 = arith.addf %62, %48 : vector<4x128xf32>
    %65 = arith.addf %34, %63 : vector<4x128xf32>
    %66 = arith.addf %35, %64 : vector<4x128xf32>
    %c2_i32 = arith.constant 2 : i32
    %c0_16 = arith.constant 0 : index
    %c0_17 = arith.constant 0 : index
    %c0_18 = arith.constant 0 : index
    %c0_19 = arith.constant 0 : index
    %67 = vector.load %arg5[%c0_16, %c0_17, %c0_18, %c0_19] : memref<1x1x4x128xf32, #tpu.memory_space<vmem>>, vector<1x1x4x128xf32>
    %68 = vector.shape_cast %67 : vector<1x1x4x128xf32> to vector<4x128xf32>
    %69 = arith.addf %68, %65 : vector<4x128xf32>
    %c0_20 = arith.constant 0 : index
    %c0_21 = arith.constant 0 : index
    %c0_22 = arith.constant 0 : index
    %c0_23 = arith.constant 0 : index
    %70 = vector.load %arg5[%c0_20, %c0_21, %c0_22, %c0_23] : memref<1x1x4x128xf32, #tpu.memory_space<vmem>>, vector<1x1x4x128xf32>
    %71 = vector.shape_cast %70 : vector<1x1x4x128xf32> to vector<4x128xf32>
    %72 = vector.shape_cast %69 : vector<4x128xf32> to vector<1x1x4x128xf32>
    tpu.vector_store %arg5[%c0_20, %c0_21, %c0_22, %c0_23], %72 {strides = array<i32>} : memref<1x1x4x128xf32, #tpu.memory_space<vmem>>, vector<1x1x4x128xf32>,
    %c0_24 = arith.constant 0 : index
    %c0_25 = arith.constant 0 : index
    %c0_26 = arith.constant 0 : index
    %c0_27 = arith.constant 0 : index
    %73 = vector.load %arg6[%c0_24, %c0_25, %c0_26, %c0_27] : memref<1x1x4x128xf32, #tpu.memory_space<vmem>>, vector<1x1x4x128xf32>
    %74 = vector.shape_cast %73 : vector<1x1x4x128xf32> to vector<4x128xf32>
    %75 = arith.addf %74, %66 : vector<4x128xf32>
    %c0_28 = arith.constant 0 : index
    %c0_29 = arith.constant 0 : index
    %c0_30 = arith.constant 0 : index
    %c0_31 = arith.constant 0 : index
    %76 = vector.load %arg6[%c0_28, %c0_29, %c0_30, %c0_31] : memref<1x1x4x128xf32, #tpu.memory_space<vmem>>, vector<1x1x4x128xf32>
    %77 = vector.shape_cast %76 : vector<1x1x4x128xf32> to vector<4x128xf32>
    %78 = vector.shape_cast %75 : vector<4x128xf32> to vector<1x1x4x128xf32>
    tpu.vector_store %arg6[%c0_28, %c0_29, %c0_30, %c0_31], %78 {strides = array<i32>} : memref<1x1x4x128xf32, #tpu.memory_space<vmem>>, vector<1x1x4x128xf32>,
    return
  }
  func.func @transform_0(%arg0: i32, %arg1: i32, %arg2: i32) -> (i32, i32, i32) {
    %c1_i32 = arith.constant 1 : i32
    %0 = arith.muli %arg1, %c1_i32 : i32
    %1 = arith.addi %0, %arg2 : i32
    %c0_i32 = arith.constant 0 : i32
    %2 = arith.minsi %1, %c0_i32 : i32
    %c0_i32_0 = arith.constant 0 : i32
    %c0_i32_1 = arith.constant 0 : i32
    return %arg0, %c0_i32_0, %2 : i32, i32, i32
  }
  func.func @transform_1(%arg0: i32, %arg1: i32, %arg2: i32) -> (i32, i32, i32) {
    %c1_i32 = arith.constant 1 : i32
    %0 = arith.muli %arg1, %c1_i32 : i32
    %1 = arith.addi %0, %arg2 : i32
    %c0_i32 = arith.constant 0 : i32
    %2 = arith.minsi %1, %c0_i32 : i32
    %c0_i32_0 = arith.constant 0 : i32
    %c0_i32_1 = arith.constant 0 : i32
    return %arg0, %c0_i32_0, %2 : i32, i32, i32
  }
  func.func @transform_2(%arg0: i32, %arg1: i32, %arg2: i32) -> (i32, i32, i32, i32) {
    %c0_i32 = arith.constant 0 : i32
    %c0_i32_0 = arith.constant 0 : i32
    %c0_i32_1 = arith.constant 0 : i32
    return %arg0, %arg1, %c0_i32, %c0_i32_0 : i32, i32, i32, i32
  }
  func.func @transform_3(%arg0: i32, %arg1: i32, %arg2: i32) -> (i32, i32, i32, i32) {
    %c0_i32 = arith.constant 0 : i32
    %c0_i32_0 = arith.constant 0 : i32
    %c0_i32_1 = arith.constant 0 : i32
    return %arg0, %arg1, %c0_i32, %c0_i32_0 : i32, i32, i32, i32
  }
}

</mosaic_0001>

<bundles_post_ra>
// kernel: tpu_custom_call.1
= control target key start
LH: loop header
LB: loop body
LE: loop exit
PB: predicated region body
PF: predicated region fallthrough
CT: control target
= control target key end

     0   :  { %9 = vsyncpa [#allocation3], 0  ;;  %s981_s0 = inlined_call_operand.hbm [shape: f32[2,4,256], index: 0, kind: input, shape index: {}]   ;;  %s982_s1 = inlined_call_operand.vmem [shape: s8[2,1,256], index: 1, kind: input, shape index: {}]   ;;  %s983_s2 = inlined_call_operand.hbm [shape: f32[2,1,4,128], index: 2, kind: output, shape index: {0}]   ;;  %s984_s3 = inlined_call_operand.hbm [shape: f32[2,1,4,128], index: 3, kind: output, shape index: {1}]  }
   0x1   :  { %11 = vsyncpa [#allocation3 + $0x1], 0 }
   0x2   :  { %12 = vsyncpa [#allocation4], 0 }
   0x3   :  { %14 = vsyncpa [#allocation4 + $0x1], 0 }
   0x4   :  { %15 = vsyncpa [#allocation7], 0 }
   0x5   :  { %17 = vsyncpa [#allocation7 + $0x1], 0  ;;  %s814_s12 = smov 0   ;;  %s816_s13 = smov 0  }
   0x6   :  { %s818_s14 = smov 0   ;;  %s820_s15 = smov 0  }
   0x7   :  { %s822_s16 = smov 0   ;;  %s824_s17 = smov 0  }
   0x8 LB: > { %s548_s18 = sadd.s32 4294967295, %s791_s17   ;;  %s549_s19 = sadd.s32 4294967294, %s791_s17   ;;  %s791_s17 = sphi %s824_s17, %s23_s17   ;;  %s787_s16 = sphi %s822_s16, %s993_s16   ;;  %s783_s15 = sphi %s820_s15, %s992_s15   ;;  %s779_s14 = sphi %s818_s14, %s991_s14   ;;  %s775_s13 = sphi %s816_s13, %s990_s13   ;;  %s771_s12 = sphi %s814_s12, %s989_s12  }
   0x9   : > { %s42_s20 = sadd.s32 1, %s787_s16  ;;  %s57_s21 = sadd.s32 1, %s779_s14 }
   0xa   : > { %p44_p0 = scmp.ge.s32.totalorder %s42_s20, 2  ;;  %p64_p1 = scmp.ne.s32.totalorder %s779_s14, %s775_s13 }
   0xb   : > { %p65_p2 = scmp.eq.s32.totalorder %s791_s17, 0  ;;  %p70_p3 = scmp.ne.s32.totalorder %s775_s13, %s771_s12 }
   0xc   : > { %s995_s20 = smov (%p44_p0, %s42_s20), 0  ;;  %p71_p5 = scmp.eq.s32.totalorder %s548_s18, 0 }
   0xd   : > { %p855_p4 = por %p65_p2, %p64_p1  ;;  %s52_s23 = ssub.s32 %s787_s16, %s995_s20 }
   0xe   : > { %p130_p6 = scmp.eq.s32.totalorder %s548_s18, 1  ;;  %p55_p7 = scmp.eq.s32.totalorder %s52_s23, 0 }
   0xf   : > { %p861_p8 = por %p71_p5, %p70_p3  ;;  %p136_p10 = scmp.eq.s32.totalorder %s549_s19, 1 }
  0x10   : > { %p865_p9 = por %p130_p6, %p64_p1  ;;  %p551_p12 = scmp.ge.s32.totalorder %s791_s17, 2 }
  0x11   : > { %s870_s26 = scalar_select %p55_p7, %s779_s14, %s57_s21  }
  0x12   : > { %p872_p11 = por %p136_p10, %p70_p3  ;;  %p588_p13 = scmp.lt.s32.totalorder %s791_s17, 2 }
  0x13   : > { %s184_s28 = sand.u32 1, %s779_s14   ;;  %s570_s30 = sshll.u32 %s787_s16, 3 }
  0x14   : > { %s552_s29 = sshll.u32 %s184_s28, 3  ;;  %s198_s6 = scalar_lea.hbm %s981_s0, %s570_s30 }
  0x15   : > { %s188_s7 = scalar_lea.vmem [#allocation2], %s552_s29  ;;  %s200_s9 = sshll.u32 %s198_s6, 4  ;;  %s201_s9 = int_to_ptr.hbm [resolvable:$true] %s200_s9 }
  0x16   : > { %s202_s8 = sshll.u32 %s188_s7, 4  ;;  %p578_p0 = pnand %p588_p13, %p855_p4  ;;  %s203_s8 = int_to_ptr.vmem [resolvable:$true] %s202_s8 }
  0x17   : > { %p555_p1 = scmp.ge.s32.totalorder %s791_s17, 1  ;;  %p225_p2 = scmp.lt.s32.totalorder %s791_s17, 3 }
  0x18   : > { %s185_s10 = scalar_lea.sflag [#allocation3], %s184_s28 }
  0x19   : > { %580 = dma.hbm_to_vmem [thread:$0]  (!%p578_p0), %s201_s9, 128, %s203_s8, %s185_s10  }
  0x1a   : > { %p226_p3 = pnand %p555_p1, %p225_p2 }
  0x1b   : > { %s888_s11 = sand.u32 (!%p226_p3), 1, %s775_s13  }
  0x1c   : > { %229 = sbr.rel (%p226_p3) target bundleno = 110 (0x6e), region = 28  ;;  %s556_s18 = sshll.u32 (!%p226_p3), %s888_s11, 3 }
  0x1d   : > { %s232_s19 = scalar_lea.sflag (!%p226_p3), [#allocation3], %s888_s11  ;;  %s235_s21 = scalar_lea.vmem (!%p226_p3), [#allocation2], %s556_s18 }
  0x21   : > { %758 = dma.done.wait (%p861_p8), %s232_s19, 128  }
  0x22   : > { %760 = vsyncadd (%p861_p8), %s232_s19, 4294967168  ;;  %s557_s22 = sshll.u32 %s888_s11, 2  ;;  %v793_v0 = vmov 0.0   ;;  %vm309_vm0 = vcmask 1043456   ;;  %v302_v1 = vld [vmem:[%s235_s21] sm:$0xf]  ;;  %v300_v39 = vlaneseq }
  0x23   : > { %s897_s23 = scalar_lea.vmem [#allocation5], %s557_s22  ;;  %s901_s28 = scalar_lea.vmem [#allocation6], %s557_s22  ;;  %v561_v2 = vld [vmem:[%s235_s21 + $0x4] sm:$0xf]  ;;  %v310_v3 = vsel %vm309_vm0, %v302_v1, -inf }
  0x24   : > { %298 = vst [vmem:[%s897_s23] sm:$0xf] %v793_v0  ;;  %v345_v4 = vsel %vm309_vm0, %v561_v2, -inf  ;;  %v311_v5 = vrot.slane %v310_v3, 4  ;;  %p283_p4 = scmp.lt.s32.totalorder %s783_s15, 1  ;;  %v301_v42 = vshrl.u32 %v300_v39, 7  ;;  %s566_s6 = sshll.u32 %s783_s15, 2 }
  0x25   : > { %299 = vst [vmem:[%s901_s28] sm:$0xf] %v793_v0  ;;  %v346_v6 = vrot.slane %v345_v4, 4  ;;  %s394_s9 = scalar_lea.hbm %s983_s2, %s566_s6  ;;  %s409_s19 = scalar_lea.hbm %s984_s3, %s566_s6 }
  0x26   : > { %v312_v7 = vmax.f32 %v310_v3, %v311_v5  ;;  %s284_s24 = scalar_select %p283_p4, %s783_s15, 1 }
  0x27   : > { %v347_v8 = vmax.f32 %v345_v4, %v346_v6  ;;  %s396_s15 = sshll.u32 %s897_s23, 4  ;;  %s398_s21 = sshll.u32 %s394_s9, 4  ;;  %s397_s15 = int_to_ptr.vmem [resolvable:$true] %s396_s15  ;;  %s399_s21 = int_to_ptr.hbm [resolvable:$true] %s398_s21 }
  0x28   : > { %v313_v9 = vrot.slane %v312_v7, 2  ;;  %s559_s29 = sshll.u32 %s284_s24, 1  ;;  %s411_s22 = sshll.u32 %s901_s28, 4  ;;  %s927_s22 = int_to_ptr.vmem [resolvable:$true] %s411_s22 }
  0x29   : > { %v348_v10 = vrot.slane %v347_v8, 2  ;;  %s289_s5 = scalar_lea.vmem %s982_s1, %s559_s29  ;;  %s413_s24 = sshll.u32 %s409_s19, 4  ;;  %s929_s24 = int_to_ptr.hbm [resolvable:$true] %s413_s24 }
  0x2a   : > { %v314_v11 = vmax.f32 %v312_v7, %v313_v9  ;;  %v303_v35 = vld [vmem:[%s289_s5] sm:$0x1]  ;;  %v562_v37 = vld [vmem:[%s289_s5 + $0x1] sm:$0x1]  ;;  %s378_s29 = scalar_lea.sflag [#allocation4], %s888_s11  ;;  %s691_s30 = sshra.s32 %s399_s21, 4  ;;  %s692_s30 = int_to_ptr.hbm [resolvable:$true] %s691_s30 }
  0x2b   : > { %v349_v12 = vmax.f32 %v347_v8, %v348_v10  ;;  %v304_v40 = vunpack.c.0.s8 %v303_v35  ;;  %v340_v41 = vunpack.c.0.s8 %v562_v37  ;;  %v371_v61 = vld [vmem:[%s897_s23] sm:$0xf]  ;;  %s693_s4 = scalar_lea.hbm %s692_s30, 4  ;;  %s697_s7 = scalar_lea.hbm %s983_s2, 8 }
  0x2c   : > { %v315_v13 = vrot.slane %v314_v11, 1  ;;  %v374_v62 = vld [vmem:[%s901_s28] sm:$0xf]  ;;  %p694_p5 = scmp.ne.s32.totalorder %s692_s30, %s693_s4  ;;  %p698_p8 = scmp.lt.s32.totalorder %s692_s30, %s983_s2 }
  0x2d   : > { %v350_v14 = vrot.slane %v349_v12, 1  ;;  %v305_v43 = vperm.slane %v304_v40, 0  ;;  %v341_v45 = vperm.slane %v340_v41, 0  ;;  %p699_p10 = scmp.lt.s32.totalorder %s697_s7, %s693_s4 }
  0x2e   : > { %v316_v15 = vmax.f32 %v314_v11, %v315_v13  ;;  %p695_p6 = pnand %p694_p5, %p865_p9 }
  0x2f   : > { %v351_v16 = vmax.f32 %v349_v12, %v350_v14  ;;  %vm306_vm1 = vcmp.eq.s32.totalorder %v301_v42, %v305_v43  ;;  %vm342_vm2 = vcmp.eq.s32.totalorder %v301_v42, %v341_v45  ;;  %p700_p13 = por %p699_p10, %p698_p8 }
  0x30   : > { %v317_v17 = vsub.f32 %v302_v1, %v316_v15  ;;  %v560_v52 = vsel %vm306_vm1, 1.0, %v793_v0  ;;  %v563_v55 = vsel %vm342_vm2, 1.0, %v793_v0  ;;  %p696_p7 = pneg %p695_p6 }
  0x31   : > { %v352_v18 = vsub.f32 %v561_v2, %v351_v16 }
  0x32   : > { %v318_v19 = vmul.f32 1.442695, %v317_v17  ;;  %p701_p0 = pnand %p700_p13, %p696_p7 }
  0x33   : > { %v353_v20 = vmul.f32 1.442695, %v352_v18 }
  0x34   : > { %639 = vpow2.f32 %v318_v19 }
  0x35   : > { %641 = vpow2.f32 %v353_v20 }
  0x3a   : > { %v640_v21 = vpop.eup %639 }
  0x3b   : > { %v642_v22 = vpop.eup %641  ;;  %v320_v23 = vsel %vm309_vm0, %v640_v21, 0.0 }
  0x3c   : > { %v321_v24 = vrot.slane %v320_v23, 4  ;;  %v355_v25 = vsel %vm309_vm0, %v642_v22, 0.0 }
  0x3d   : > { %v356_v26 = vrot.slane %v355_v25, 4 }
  0x3e   : > { %v322_v27 = vadd.f32 %v321_v24, %v320_v23 }
  0x3f   : > { %v357_v28 = vadd.f32 %v356_v26, %v355_v25 }
  0x40   : > { %v323_v29 = vrot.slane %v322_v27, 2 }
  0x41   : > { %v358_v30 = vrot.slane %v357_v28, 2 }
  0x42   : > { %v324_v31 = vadd.f32 %v323_v29, %v322_v27 }
  0x43   : > { %v359_v32 = vadd.f32 %v358_v30, %v357_v28 }
  0x44   : > { %v325_v33 = vrot.slane %v324_v31, 1 }
  0x45   : > { %v360_v34 = vrot.slane %v359_v32, 1 }
  0x46   : > { %v326_v36 = vadd.f32 %v325_v33, %v324_v31 }
  0x47   : > { %v361_v38 = vadd.f32 %v360_v34, %v359_v32 }
  0x48   : > { %643 = vrcp.f32 %v326_v36 }
  0x49   : > { %645 = vrcp.f32 %v361_v38 }
  0x4e   : > { %v644_v44 = vpop.eup %643 }
  0x4f   : > { %v646_v46 = vpop.eup %645  ;;  %v328_v47 = vmul.f32 %v644_v44, %v326_v36 }
  0x50   : > { %v363_v48 = vmul.f32 %v646_v46, %v361_v38 }
  0x51   : > { %v329_v49 = vsub.f32 2.0, %v328_v47 }
  0x52   : > { %v364_v50 = vsub.f32 2.0, %v363_v48 }
  0x53   : > { %v330_v51 = vmul.f32 %v644_v44, %v329_v49 }
  0x54   : > { %v365_v53 = vmul.f32 %v646_v46, %v364_v50 }
  0x55   : > { %v331_v54 = vmul.f32 %v640_v21, %v330_v51 }
  0x56   : > { %v366_v56 = vmul.f32 %v642_v22, %v365_v53 }
  0x57   : > { %v332_v57 = vmul.f32 %v560_v52, %v331_v54  ;;  %v333_v58 = vadd.f32 %v560_v52, %v331_v54 }
  0x58   : > { %v367_v59 = vmul.f32 %v563_v55, %v366_v56  ;;  %v368_v60 = vadd.f32 %v563_v55, %v366_v56 }
  0x5a   : > { %v369_v63 = vadd.f32 %v367_v59, %v332_v57  ;;  %v370_v0 = vadd.f32 %v368_v60, %v333_v58 }
  0x5c   : > { %v372_v1 = vadd.f32 %v371_v61, %v369_v63  ;;  %v375_v2 = vadd.f32 %v374_v62, %v370_v0 }
  0x5e   : > { %373 = vst [vmem:[%s897_s23] sm:$0xf] %v372_v1 }
  0x5f   : > { %376 = vst [vmem:[%s901_s28] sm:$0xf] %v375_v2 }
  0x60   : > { %704 = shalt.err (!%p701_p0)
}
  0x61   : > { %573 = dma.vmem_to_hbm [thread:$0]  (%p865_p9), %s397_s15, 64, %s399_s21, %s378_s29  }
  0x62   : > { %s383_s23 = scalar_lea.sflag [#allocation7], %s888_s11  ;;  %s719_s28 = sshra.s32 %s929_s24, 4  ;;  %s720_s28 = int_to_ptr.hbm [resolvable:$true] %s719_s28 }
  0x63   : > { %s721_s10 = scalar_lea.hbm %s720_s28, 4  ;;  %s725_s30 = scalar_lea.hbm %s984_s3, 8 }
  0x64   : > { %p722_p1 = scmp.ne.s32.totalorder %s720_s28, %s721_s10  ;;  %p726_p4 = scmp.lt.s32.totalorder %s720_s28, %s984_s3 }
  0x65   : > { %p727_p5 = scmp.lt.s32.totalorder %s725_s30, %s721_s10 }
  0x66   : > { %p723_p2 = pnand %p722_p1, %p865_p9 }
  0x67   : > { %p728_p6 = por %p727_p5, %p726_p4 }
  0x68   : > { %p724_p3 = pneg %p723_p2 }
  0x6a   : > { %p729_p7 = pnand %p728_p6, %p724_p3 }
  0x6c   : > { %732 = shalt.err (!%p729_p7)
}
  0x6d   : > { %574 = dma.vmem_to_hbm [thread:$0]  (%p865_p9), %s927_s22, 64, %s929_s24, %s383_s23  }
  0x6e PF: > { %s425_s11 = sand.u32 1, %s771_s12   ;;  %p582_p8 = pnand %p551_p12, %p872_p11 }
  0x6f   : > { %s426_s15 = scalar_lea.sflag [#allocation4], %s425_s11 }
  0x70   : > { %p583_p10 = pneg %p582_p8 }
  0x72   : > { %762 = dma.done.wait (%p583_p10), %s426_s15, 64  }
  0x73   : > { %764 = vsyncadd (%p583_p10), %s426_s15, 4294967232  ;;  %s436_s21 = scalar_lea.sflag [#allocation7], %s425_s11 }
  0x74   : > { %766 = dma.done.wait (%p583_p10), %s436_s21, 64  }
  0x75   : > { %768 = vsyncadd (%p583_p10), %s436_s21, 4294967232  ;;  %s23_s17 = sadd.s32 1, %s791_s17   ;;  %s989_s12 = smov %s775_s13 }
  0x76   : > { %p20_p13 = scmp.ge.s32.totalorder %s23_s17, 4   ;;  %s990_s13 = smov %s779_s14 }
  0x77   : > { %s991_s14 = smov %s870_s26  ;;  %s992_s15 = smov %s787_s16 }
  0x78   : > { %s993_s16 = smov %s995_s20  ;;  %22 = sbr.rel (!%p20_p13) target bundleno = 8 (0x8), region = 99 }
  0x7d   :  { %442 = vsyncpa [#allocation3], 1 }
  0x7e   :  { %444 = vsyncpa [#allocation3 + $0x1], 1 }
  0x7f   :  { %445 = vsyncpa [#allocation4], 1 }
  0x80   :  { %447 = vsyncpa [#allocation4 + $0x1], 1 }
  0x81   :  { %448 = vsyncpa [#allocation7], 1 }
  0x82   :  { %450 = vsyncpa [#allocation7 + $0x1], 1 }

</bundles_post_ra>
